<compile_context>
chip_gen: v5e
topology: v5e:2x2
jax: 0.10.0
libtpu: 0.0.40
codegen_flags: <defaults>
</compile_context>

<pallas_src>
import math

import jax
import jax.numpy as jnp
from jax.experimental import pallas as pl
from jax.experimental.pallas import tpu as pltpu


def _round_up(x: int, m: int) -> int:
    return (x + m - 1) // m * m


def _sublane(dtype) -> int:
    # Native sublane tile height: 8 rows of 32-bit; packed dtypes stack.
    return 8 * (4 // jnp.dtype(dtype).itemsize)


def _div128_candidates(n: int, cap: int = 2048):
    """Multiples of 128 that divide n (n itself a multiple of 128), descending, <= cap."""
    blocks = n // 128
    cands = [128 * d for d in range(blocks, 0, -1) if blocks % d == 0 and 128 * d <= cap]
    return cands if cands else [128]


# --- kernels ----------------------------------------------------------------

def _linear_kernel_f32out(x_ref, wt_ref, b_ref, o_ref):
    # x_ref: (tm, tk)  wt_ref: (tk, tn)  b_ref: (1, tn)  o_ref: (tm, tn) f32.
    # o_ref's block index ignores k, so it stays resident in VMEM across the
    # K axis -> accumulate into it directly (no scratch, no epilogue copy).
    # NOTE: relies on K being the innermost (fastest-varying) grid axis.
    k = pl.program_id(2)

    @pl.when(k == 0)
    def _():
        o_ref[...] = jnp.zeros_like(o_ref)

    o_ref[...] += jnp.dot(x_ref[...], wt_ref[...], preferred_element_type=jnp.float32)

    @pl.when(k == pl.num_programs(2) - 1)
    def _():
        o_ref[...] += b_ref[...].astype(o_ref.dtype)


def _linear_kernel_scratch(x_ref, wt_ref, b_ref, o_ref, acc_ref):
    # Low-precision output path: f32 accumulator scratch, cast once at the end.
    k = pl.program_id(2)

    @pl.when(k == 0)
    def _():
        acc_ref[...] = jnp.zeros_like(acc_ref)

    acc_ref[...] += jnp.dot(x_ref[...], wt_ref[...], preferred_element_type=jnp.float32)

    @pl.when(k == pl.num_programs(2) - 1)
    def _():
        o_ref[...] = (acc_ref[...] + b_ref[...].astype(jnp.float32)).astype(o_ref.dtype)


# --- wrapper ----------------------------------------------------------------

# VMEM budget for the (double-buffered) working set.  14 MiB fits under the
# v5e default scoped VMEM (16 MiB) with headroom and is comfortably under the
# v6e/v7x 32 MiB defaults, so no vmem_limit_bytes override is needed.
_VMEM_BUDGET_BYTES = 14 << 20


def perceptron_forward(x, weight, bias):
    """x: (B, in_dim); weight: (out_dim, in_dim); bias: (out_dim,). Returns (B, out_dim)."""
    B, in_dim = x.shape
    out_dim = weight.shape[0]
    out_dtype = x.dtype

    # ---- padded problem shape (hardware minimums only) ----
    sub = _sublane(x.dtype)
    Mp = _round_up(B, sub)
    Np = _round_up(out_dim, 128)
    Kp = _round_up(in_dim, 128)

    # ---- tile selection ----
    # M: cover the whole batch when it fits so W is read from HBM exactly once;
    # otherwise tile at 512 rows (multiple of 256 -> fills the v6e/v7x MXU).
    if Mp <= 512:
        tm = Mp
    else:
        tm = 512
        Mp = _round_up(Mp, tm)

    xb = jnp.dtype(x.dtype).itemsize
    wb = jnp.dtype(weight.dtype).itemsize
    ob = jnp.dtype(out_dtype).itemsize
    use_scratch = out_dtype != jnp.float32

    # N, K: largest dividing 128-multiples under the VMEM budget.  Bigger tn
    # first (fewer N blocks -> fewer x re-reads), then the biggest tk that fits.
    tn_cands = _div128_candidates(Np)
    tk_cands = _div128_candidates(Kp)
    tn, tk = tn_cands[-1], tk_cands[-1]
    done = False
    for tn_c in tn_cands:
        for tk_c in tk_cands:
            ws = (2 * (tm * tk_c * xb + tk_c * tn_c * wb + tn_c * 4)
                  + tm * tn_c * ob
                  + (tm * tn_c * 4 if use_scratch else 0))
            if ws <= _VMEM_BUDGET_BYTES:
                tn, tk, done = tn_c, tk_c, True
                break
        if done:
            break

    # ---- operand preparation (pads are skipped when already aligned) ----
    x_p = x
    if (Mp, Kp) != (B, in_dim):
        x_p = jnp.pad(x, ((0, Mp - B), (0, Kp - in_dim)))

    # One-time transpose to (in_dim, out_dim): kernel runs the canonical
    # (tm,tk)@(tk,tn) matmul, pure MXU, no in-kernel transpose.
    w_t = weight.T
    if (Kp, Np) != (in_dim, out_dim):
        w_t = jnp.pad(w_t, ((0, Kp - in_dim), (0, Np - out_dim)))

    b_p = bias
    if Np != out_dim:
        b_p = jnp.pad(bias, (0, Np - out_dim))
    b_p = b_p.reshape(1, Np)

    grid = (Mp // tm, Np // tn, Kp // tk)  # K MUST stay innermost (accumulator pattern).

    kernel = _linear_kernel_scratch if use_scratch else _linear_kernel_f32out
    scratch_shapes = [pltpu.VMEM((tm, tn), jnp.float32)] if use_scratch else []

    out_p = pl.pallas_call(
        kernel,
        out_shape=jax.ShapeDtypeStruct((Mp, Np), out_dtype),
        grid_spec=pltpu.PrefetchScalarGridSpec(
            num_scalar_prefetch=0,
            grid=grid,
            in_specs=[
                pl.BlockSpec((tm, tk), lambda i, j, k: (i, k)),  # x tile
                pl.BlockSpec((tk, tn), lambda i, j, k: (k, j)),  # W^T tile
                pl.BlockSpec((1, tn), lambda i, j, k: (0, j)),   # bias tile
            ],
            out_specs=pl.BlockSpec((tm, tn), lambda i, j, k: (i, j)),
            scratch_shapes=scratch_shapes,
        ),
        compiler_params=pltpu.CompilerParams(
            dimension_semantics=("parallel", "parallel", "arbitrary"),
        ),
    )(x_p, w_t, b_p)

    if (Mp, Np) != (B, out_dim):
        out_p = out_p[:B, :out_dim]
    return out_p


def init_params(key, input_dim, output_dim):
    """Deterministic init mimicking torch.nn.Linear defaults (uniform +-1/sqrt(fan_in))."""
    kw, kb = jax.random.split(key)
    bound = 1.0 / math.sqrt(input_dim)
    weight = jax.random.uniform(
        kw, (output_dim, input_dim), jnp.float32, minval=-bound, maxval=bound
    )
    bias = jax.random.uniform(
        kb, (output_dim,), jnp.float32, minval=-bound, maxval=bound
    )
    return weight, bias


if __name__ == "__main__":
    fwd = jax.jit(perceptron_forward)

    # Small shapes matching the module spec: input_dim=3, output_dim=2.
    input_dim, output_dim = 3, 2
    batch = 8

    key = jax.random.PRNGKey(0)
    kx, kp = jax.random.split(key)

    x = jax.random.normal(kx, (batch, input_dim), jnp.float32)
    weight, bias = init_params(kp, input_dim, output_dim)

    y = fwd(x, weight, bias)
    jax.block_until_ready(y)

    y_ref = x @ weight.T + bias
    assert y.shape == (batch, output_dim)
    assert jnp.allclose(y, y_ref, atol=1e-5, rtol=1e-5)

    # Larger problem to exercise the tile-selection / padding-avoidance path
    # (640 -> tn=640, 1152 -> tk=1152, tm=384: single-block grid, no pads
    #  beyond the 128-rounding of N/K, W read once).
    B2, in2, out2 = 384, 1152, 640
    k1, k2, k3 = jax.random.split(jax.random.PRNGKey(1), 3)
    x2 = jax.random.normal(k1, (B2, in2), jnp.float32)
    w2 = jax.random.normal(k2, (out2, in2), jnp.float32) * 0.02
    b2 = jax.random.normal(k3, (out2,), jnp.float32)
    y2 = fwd(x2, w2, b2)
    jax.block_until_ready(y2)
    y2_ref = x2 @ w2.T + b2
    assert jnp.allclose(y2, y2_ref, atol=1e-3, rtol=1e-3)

    print("KERNEL_OK")
</pallas_src>

<mosaic_0001>
module attributes {stable_mosaic.version = 11 : i64} {
  func.func @_linear_kernel_f32out(%arg0: i32, %arg1: i32, %arg2: i32, %arg3: memref<8x128xf32, #tpu.memory_space<vmem>>, %arg4: memref<128x128xf32, #tpu.memory_space<vmem>>, %arg5: memref<1x128xf32, #tpu.memory_space<vmem>>, %arg6: memref<8x128xf32, #tpu.memory_space<vmem>>) attributes {dimension_semantics = [#tpu.dimension_semantics<parallel>, #tpu.dimension_semantics<parallel>, #tpu.dimension_semantics<arbitrary>], iteration_bounds = array<i64: 1, 1, 1>, scalar_prefetch = 0 : i64, scratch_operands = 0 : i64, tpu.core_type = #tpu.core_type<tc>, window_params = [{transform_indices = @transform_0, window_bounds = array<i64: 8, 128>}, {transform_indices = @transform_1, window_bounds = array<i64: 128, 128>}, {transform_indices = @transform_2, window_bounds = array<i64: 1, 128>}, {transform_indices = @transform_3, window_bounds = array<i64: 8, 128>}]} {
    %c0_i32 = arith.constant 0 : i32
    %0 = arith.cmpi eq, %arg2, %c0_i32 : i32
    %1 = arith.extui %0 : i1 to i32
    %c0_i32_0 = arith.constant 0 : i32
    %2 = arith.cmpi ne, %1, %c0_i32_0 : i32
    scf.if %2 {
      %cst_10 = arith.constant 0.000000e+00 : f32
      %12 = vector.broadcast %cst_10 : f32 to vector<8x128xf32>
      %c0_11 = arith.constant 0 : index
      %c0_12 = arith.constant 0 : index
      %13 = vector.load %arg6[%c0_11, %c0_12] : memref<8x128xf32, #tpu.memory_space<vmem>>, vector<8x128xf32>
      tpu.vector_store %arg6[%c0_11, %c0_12], %12 {strides = array<i32>} : memref<8x128xf32, #tpu.memory_space<vmem>>, vector<8x128xf32>,
    } else {
    }
    %c0 = arith.constant 0 : index
    %c0_1 = arith.constant 0 : index
    %3 = vector.load %arg6[%c0, %c0_1] : memref<8x128xf32, #tpu.memory_space<vmem>>, vector<8x128xf32>
    %c0_2 = arith.constant 0 : index
    %c0_3 = arith.constant 0 : index
    %4 = vector.load %arg3[%c0_2, %c0_3] : memref<8x128xf32, #tpu.memory_space<vmem>>, vector<8x128xf32>
    %c0_4 = arith.constant 0 : index
    %c0_5 = arith.constant 0 : index
    %5 = vector.load %arg4[%c0_4, %c0_5] : memref<128x128xf32, #tpu.memory_space<vmem>>, vector<128x128xf32>
    %cst = arith.constant dense<0.000000e+00> : vector<8x128xf32>
    %6 = tpu.matmul %4, %5, %cst {dimension_numbers = #tpu.dot_dimension_numbers<[1], [0], [0], [1], [0, 0, 1, 1], [], []>} : vector<8x128xf32>, vector<128x128xf32>, vector<8x128xf32> -> vector<8x128xf32>
    %7 = arith.addf %3, %6 : vector<8x128xf32>
    %c0_6 = arith.constant 0 : index
    %c0_7 = arith.constant 0 : index
    %8 = vector.load %arg6[%c0_6, %c0_7] : memref<8x128xf32, #tpu.memory_space<vmem>>, vector<8x128xf32>
    tpu.vector_store %arg6[%c0_6, %c0_7], %7 {strides = array<i32>} : memref<8x128xf32, #tpu.memory_space<vmem>>, vector<8x128xf32>,
    %c0_i32_8 = arith.constant 0 : i32
    %9 = arith.cmpi eq, %arg2, %c0_i32_8 : i32
    %10 = arith.extui %9 : i1 to i32
    %c0_i32_9 = arith.constant 0 : i32
    %11 = arith.cmpi ne, %10, %c0_i32_9 : i32
    scf.if %11 {
      %c0_10 = arith.constant 0 : index
      %c0_11 = arith.constant 0 : index
      %12 = vector.load %arg6[%c0_10, %c0_11] : memref<8x128xf32, #tpu.memory_space<vmem>>, vector<8x128xf32>
      %c0_12 = arith.constant 0 : index
      %c0_13 = arith.constant 0 : index
      %13 = vector.load %arg5[%c0_12, %c0_13] : memref<1x128xf32, #tpu.memory_space<vmem>>, vector<1x128xf32>
      %14 = vector.broadcast %13 : vector<1x128xf32> to vector<8x128xf32>
      %15 = arith.addf %12, %14 : vector<8x128xf32>
      %c0_14 = arith.constant 0 : index
      %c0_15 = arith.constant 0 : index
      %16 = vector.load %arg6[%c0_14, %c0_15] : memref<8x128xf32, #tpu.memory_space<vmem>>, vector<8x128xf32>
      tpu.vector_store %arg6[%c0_14, %c0_15], %15 {strides = array<i32>} : memref<8x128xf32, #tpu.memory_space<vmem>>, vector<8x128xf32>,
    } else {
    }
    return
  }
  func.func @transform_0(%arg0: i32, %arg1: i32, %arg2: i32) -> (i32, i32) {
    %c0_i32 = arith.constant 0 : i32
    return %arg0, %arg2 : i32, i32
  }
  func.func @transform_1(%arg0: i32, %arg1: i32, %arg2: i32) -> (i32, i32) {
    %c0_i32 = arith.constant 0 : i32
    return %arg2, %arg1 : i32, i32
  }
  func.func @transform_2(%arg0: i32, %arg1: i32, %arg2: i32) -> (i32, i32) {
    %c0_i32 = arith.constant 0 : i32
    %c0_i32_0 = arith.constant 0 : i32
    return %c0_i32, %arg1 : i32, i32
  }
  func.func @transform_3(%arg0: i32, %arg1: i32, %arg2: i32) -> (i32, i32) {
    %c0_i32 = arith.constant 0 : i32
    return %arg0, %arg1 : i32, i32
  }
}

</mosaic_0001>

<bundles_post_ra>
// kernel: perceptron_forward.1
= control target key start
LH: loop header
LB: loop body
LE: loop exit
PB: predicated region body
PF: predicated region fallthrough
CT: control target
= control target key end

     0   :  { %s152_s1 = inlined_call_operand.vmem [shape: f32[128,128], index: 1, kind: input, shape index: {}]   ;;  %s153_s2 = inlined_call_operand.vmem [shape: f32[1,128], index: 2, kind: input, shape index: {}]   ;;  %s154_s0 = inlined_call_operand.vmem [shape: f32[8,128], index: 0, kind: input, shape index: {}]   ;;  %s155_s3 = inlined_call_operand.vmem [shape: f32[8,128], index: 3, kind: output, shape index: {}]  }
   0x1   :  { %v36_v0 = vld [vmem:[%s152_s1 + $0x78] sm:$0xff]  ;;  %v35_v1 = vld [vmem:[%s152_s1 + $0x70] sm:$0xff]  ;;  %v34_v2 = vld [vmem:[%s152_s1 + $0x68] sm:$0xff] }
   0x2   :  { %37 = vmatpush.msra.mxu0 %v36_v0  ;;  %v33_v3 = vld [vmem:[%s152_s1 + $0x60] sm:$0xff]  ;;  %v32_v4 = vld [vmem:[%s152_s1 + $0x58] sm:$0xff]  ;;  %v31_v5 = vld [vmem:[%s152_s1 + $0x50] sm:$0xff] }
   0x3   :  { %v30_v6 = vld [vmem:[%s152_s1 + $0x48] sm:$0xff]  ;;  %v29_v7 = vld [vmem:[%s152_s1 + $0x40] sm:$0xff]  ;;  %v28_v8 = vld [vmem:[%s152_s1 + $0x38] sm:$0xff] }
   0x4   :  { %38 = vmatpush.msra.mxu0 %v35_v1  ;;  %v27_v9 = vld [vmem:[%s152_s1 + $0x30] sm:$0xff]  ;;  %v26_v10 = vld [vmem:[%s152_s1 + $0x28] sm:$0xff]  ;;  %v25_v11 = vld [vmem:[%s152_s1 + $0x20] sm:$0xff] }
   0x5   :  { %v24_v12 = vld [vmem:[%s152_s1 + $0x18] sm:$0xff]  ;;  %v23_v13 = vld [vmem:[%s152_s1 + $0x10] sm:$0xff]  ;;  %v22_v14 = vld [vmem:[%s152_s1 + $0x8] sm:$0xff] }
   0x6   :  { %39 = vmatpush.msra.mxu0 %v34_v2  ;;  %v21_v15 = vld [vmem:[%s152_s1] sm:$0xff] }
   0x7   :  { %v20_v16 = vld [vmem:[%s154_s0] sm:$0xff] }
   0x8   :  { %40 = vmatpush.msra.mxu0 %v33_v3  ;;  %v74_v17 = vld [vmem:[%s153_s2] ss:$0 sm:$0xff] }
   0xa   :  { %41 = vmatpush.msra.mxu0 %v32_v4 }
   0xc   :  { %42 = vmatpush.msra.mxu0 %v31_v5 }
   0xe   :  { %43 = vmatpush.msra.mxu0 %v30_v6 }
  0x10   :  { %44 = vmatpush.msra.mxu0 %v29_v7 }
  0x12   :  { %45 = vmatpush.msra.mxu0 %v28_v8 }
  0x14   :  { %46 = vmatpush.msra.mxu0 %v27_v9 }
  0x16   :  { %47 = vmatpush.msra.mxu0 %v26_v10 }
  0x18   :  { %48 = vmatpush.msra.mxu0 %v25_v11 }
  0x1a   :  { %49 = vmatpush.msra.mxu0 %v24_v12 }
  0x1c   :  { %50 = vmatpush.msra.mxu0 %v23_v13 }
  0x1e   :  { %51 = vmatpush.msra.mxu0 %v22_v14 }
  0x20   :  { %52 = vmatpush.msra.mxu0 %v21_v15 }
  0x21   :  { %53 = vmatmul.f32.vlgmr.msra.gmra.mxu0 %v20_v16 }
  0x9e   :  { %v54_v18 = vpop.f32.mrf.mxu0 }
  0x9f   :  { %v67_v19 = vadd.f32 %v74_v17, %v54_v18 }
  0xa1   :  { %68 = vst [vmem:[%s155_s3] sm:$0xff] %v67_v19 }

</bundles_post_ra>
